<compile_context>
chip_gen: v5e
topology: v5e:2x2
jax: 0.10.0
libtpu: 0.0.40
codegen_flags: <defaults>
</compile_context>

<pallas_src>
import jax
import jax.numpy as jnp
from jax.experimental import pallas as pl
from jax.experimental.pallas import tpu as pltpu


def _round_up(n, m):
    return ((n + m - 1) // m) * m


def _gated_block_kernel(a_ref, x_ref, w_ref, b_ref, out_ref, acc_ref):
    """One (row-block i, reduction-block k) grid step.

    a_ref  : (tile, tile) bf16  block of dense weighted adjacency A[target, source]
    x_ref  : (tile, Hp)   bf16  block of node features (lane-padded)
    w_ref  : (Hp, Hp)     f32   nn1 weight in [in, out] layout (zero-padded)
    b_ref  : (1, Hp)      f32   nn1 bias (zero-padded)
    out_ref: (tile, Hp)   f32   output row-block (resident across k)
    acc_ref: (tile, Hp)   f32   VMEM accumulator for the propagation A @ x
    """
    k = pl.program_id(1)

    @pl.when(k == 0)
    def _():
        acc_ref[...] = jnp.zeros_like(acc_ref)

    # GatedConv(aggr='add'): h[i] = sum_e edge_weight[e] * x[src_e]  ==  (A @ x)[i]
    acc_ref[...] += jnp.dot(a_ref[...], x_ref[...],
                            preferred_element_type=jnp.float32)

    @pl.when(k == pl.num_programs(1) - 1)
    def _():
        h = acc_ref[...]
        # nn1: Linear(hidden, hidden)
        y = jnp.dot(h, w_ref[...], preferred_element_type=jnp.float32) + b_ref[...]
        # TODO(synk): F.dropout(p=0.2, training=self.training) is identity in eval mode.
        out_ref[...] = y


def gated_block_forward(x, w1, b1, a, *, tile=256):
    """x: [N, H] f32, w1: [H, H] (pre-transposed to [in, out]), b1: [1, H],
    a: [N, N] dense weighted adjacency with A[target, source]."""
    N, H = x.shape
    Hp = max(128, _round_up(H, 128))                       # lane-dense state / output
    tile = min(tile, max(128, _round_up(N, 128)))
    Np = _round_up(max(N, tile), tile)

    # Pad + cast: bf16 for the streamed operands (A, x); f32 accumulation in-kernel.
    a_p = jnp.zeros((Np, Np), jnp.bfloat16).at[:N, :N].set(a.astype(jnp.bfloat16))
    x_p = jnp.zeros((Np, Hp), jnp.bfloat16).at[:N, :H].set(x.astype(jnp.bfloat16))
    w_p = jnp.zeros((Hp, Hp), jnp.float32).at[:H, :H].set(w1.astype(jnp.float32))
    b_p = jnp.zeros((1, Hp), jnp.float32).at[:, :H].set(b1.astype(jnp.float32))

    gm = Np // tile
    gk = Np // tile

    grid_spec = pltpu.PrefetchScalarGridSpec(
        num_scalar_prefetch=0,
        grid=(gm, gk),                                     # reduction axis last
        in_specs=[
            pl.BlockSpec((tile, tile), lambda i, k: (i, k)),   # A tile (streamed)
            pl.BlockSpec((tile, Hp), lambda i, k: (k, 0)),     # x tile (streamed)
            pl.BlockSpec((Hp, Hp), lambda i, k: (0, 0)),       # w1 (resident)
            pl.BlockSpec((1, Hp), lambda i, k: (0, 0)),        # b1 (resident)
        ],
        out_specs=pl.BlockSpec((tile, Hp), lambda i, k: (i, 0)),
        scratch_shapes=[pltpu.VMEM((tile, Hp), jnp.float32)],
    )

    # VMEM budget: double-buffered A & x tiles + weights + resident out + accumulator.
    vmem_need = (2 * tile * tile * 2 + 2 * tile * Hp * 2 +
                 2 * Hp * Hp * 4 + 2 * Hp * 4 +
                 2 * tile * Hp * 4 + tile * Hp * 4)
    vmem_limit = int(min(max(2 * vmem_need, 16 << 20), 48 << 20))

    cost = pl.CostEstimate(
        flops=2 * Np * Np * Hp + 2 * Np * Hp * Hp,
        transcendentals=0,
        bytes_accessed=Np * Np * 2 + Np * Hp * 2 + Hp * Hp * 4 + Np * Hp * 4,
    )

    out_p = pl.pallas_call(
        _gated_block_kernel,
        out_shape=jax.ShapeDtypeStruct((Np, Hp), jnp.float32),
        grid_spec=grid_spec,
        compiler_params=pltpu.CompilerParams(
            dimension_semantics=("parallel", "arbitrary"),
            vmem_limit_bytes=vmem_limit,
        ),
        cost_estimate=cost,
    )(a_p, x_p, w_p, b_p)

    return out_p[:N, :H]


def build_weighted_adj(edge_index, edge_weight, num_nodes):
    """Dense A[target, source] = sum of edge_weight over edges source -> target.
    (GatedConv: aggr='add', message = edge_weight * x_j, no self-loops, no norm)."""
    src, dst = edge_index[0], edge_index[1]
    return jnp.zeros((num_nodes, num_nodes), jnp.float32).at[dst, src].add(edge_weight)


if __name__ == "__main__":
    hidden = 32        # GatedBlock default
    N = 200            # nodes (pads to 256 -> 2x2 grid at tile=128)
    E = 600            # edges

    key = jax.random.PRNGKey(0)
    kx, ke, kw, k1, k2 = jax.random.split(key, 5)

    x = jax.random.normal(kx, (N, hidden), jnp.float32)
    edge_index = jax.random.randint(ke, (2, E), 0, N, dtype=jnp.int32)
    edge_weight = jax.random.uniform(kw, (E,), jnp.float32, 0.5, 1.5)

    # torch.nn.Linear-style init; weight stored pre-transposed as [in, out].
    lim = 1.0 / jnp.sqrt(hidden)
    w1 = jax.random.uniform(k1, (hidden, hidden), jnp.float32, -lim, lim)
    b1 = jax.random.uniform(k2, (1, hidden), jnp.float32, -lim, lim)

    a = build_weighted_adj(edge_index, edge_weight, N)

    out = gated_block_forward(x, w1, b1, a, tile=128)   # tile=128 -> multi-block grid
    out = jax.block_until_ready(out)

    # Pure-JAX reference (same bf16 operands for the propagation, f32 accumulation).
    h_ref = jnp.dot(a.astype(jnp.bfloat16), x.astype(jnp.bfloat16),
                    preferred_element_type=jnp.float32)
    ref = jnp.dot(h_ref, w1, preferred_element_type=jnp.float32,
                  precision=jax.lax.Precision.HIGHEST) + b1

    assert out.shape == (N, hidden)
    assert bool(jnp.all(jnp.isfinite(out)))
    assert bool(jnp.allclose(out, ref, atol=1e-2, rtol=1e-2))
    print("KERNEL_OK")
</pallas_src>

<mosaic_0001>
module attributes {stable_mosaic.version = 11 : i64} {
  func.func @_gated_block_kernel(%arg0: i32, %arg1: i32, %arg2: memref<128x128xbf16, #tpu.memory_space<vmem>>, %arg3: memref<128x128xbf16, #tpu.memory_space<vmem>>, %arg4: memref<128x128xf32, #tpu.memory_space<vmem>>, %arg5: memref<1x128xf32, #tpu.memory_space<vmem>>, %arg6: memref<128x128xf32, #tpu.memory_space<vmem>>, %arg7: memref<128x128xf32, #tpu.memory_space<vmem>>) attributes {dimension_semantics = [#tpu.dimension_semantics<parallel>, #tpu.dimension_semantics<arbitrary>], iteration_bounds = array<i64: 2, 2>, scalar_prefetch = 0 : i64, scratch_operands = 1 : i64, tpu.core_type = #tpu.core_type<tc>, window_params = [{transform_indices = @transform_0, window_bounds = array<i64: 128, 128>}, {transform_indices = @transform_1, window_bounds = array<i64: 128, 128>}, {pipeline_mode = #tpu.pipeline_mode<synchronous>, transform_indices = @transform_2, window_bounds = array<i64: 128, 128>}, {pipeline_mode = #tpu.pipeline_mode<synchronous>, transform_indices = @transform_3, window_bounds = array<i64: 1, 128>}, {transform_indices = @transform_4, window_bounds = array<i64: 128, 128>}]} {
    %c0_i32 = arith.constant 0 : i32
    %0 = arith.cmpi eq, %arg1, %c0_i32 : i32
    %1 = arith.extui %0 : i1 to i32
    %c0_i32_0 = arith.constant 0 : i32
    %2 = arith.cmpi ne, %1, %c0_i32_0 : i32
    scf.if %2 {
      %cst_9 = arith.constant 0.000000e+00 : f32
      %12 = vector.broadcast %cst_9 : f32 to vector<128x128xf32>
      %c0_10 = arith.constant 0 : index
      %c0_11 = arith.constant 0 : index
      %13 = vector.load %arg7[%c0_10, %c0_11] : memref<128x128xf32, #tpu.memory_space<vmem>>, vector<128x128xf32>
      tpu.vector_store %arg7[%c0_10, %c0_11], %12 {strides = array<i32>} : memref<128x128xf32, #tpu.memory_space<vmem>>, vector<128x128xf32>,
    } else {
    }
    %c0 = arith.constant 0 : index
    %c0_1 = arith.constant 0 : index
    %3 = vector.load %arg7[%c0, %c0_1] : memref<128x128xf32, #tpu.memory_space<vmem>>, vector<128x128xf32>
    %c0_2 = arith.constant 0 : index
    %c0_3 = arith.constant 0 : index
    %4 = vector.load %arg2[%c0_2, %c0_3] : memref<128x128xbf16, #tpu.memory_space<vmem>>, vector<128x128xbf16>
    %c0_4 = arith.constant 0 : index
    %c0_5 = arith.constant 0 : index
    %5 = vector.load %arg3[%c0_4, %c0_5] : memref<128x128xbf16, #tpu.memory_space<vmem>>, vector<128x128xbf16>
    %cst = arith.constant dense<0.000000e+00> : vector<128x128xf32>
    %6 = tpu.matmul %4, %5, %cst {dimension_numbers = #tpu.dot_dimension_numbers<[1], [0], [0], [1], [0, 0, 1, 1], [], []>} : vector<128x128xbf16>, vector<128x128xbf16>, vector<128x128xf32> -> vector<128x128xf32>
    %7 = arith.addf %3, %6 : vector<128x128xf32>
    %c0_6 = arith.constant 0 : index
    %c0_7 = arith.constant 0 : index
    %8 = vector.load %arg7[%c0_6, %c0_7] : memref<128x128xf32, #tpu.memory_space<vmem>>, vector<128x128xf32>
    tpu.vector_store %arg7[%c0_6, %c0_7], %7 {strides = array<i32>} : memref<128x128xf32, #tpu.memory_space<vmem>>, vector<128x128xf32>,
    %c1_i32 = arith.constant 1 : i32
    %9 = arith.cmpi eq, %arg1, %c1_i32 : i32
    %10 = arith.extui %9 : i1 to i32
    %c0_i32_8 = arith.constant 0 : i32
    %11 = arith.cmpi ne, %10, %c0_i32_8 : i32
    scf.if %11 {
      %c0_9 = arith.constant 0 : index
      %c0_10 = arith.constant 0 : index
      %12 = vector.load %arg7[%c0_9, %c0_10] : memref<128x128xf32, #tpu.memory_space<vmem>>, vector<128x128xf32>
      %c0_11 = arith.constant 0 : index
      %c0_12 = arith.constant 0 : index
      %13 = vector.load %arg4[%c0_11, %c0_12] : memref<128x128xf32, #tpu.memory_space<vmem>>, vector<128x128xf32>
      %cst_13 = arith.constant dense<0.000000e+00> : vector<128x128xf32>
      %14 = tpu.matmul %12, %13, %cst_13 {dimension_numbers = #tpu.dot_dimension_numbers<[1], [0], [0], [1], [0, 0, 1, 1], [], []>} : vector<128x128xf32>, vector<128x128xf32>, vector<128x128xf32> -> vector<128x128xf32>
      %c0_14 = arith.constant 0 : index
      %c0_15 = arith.constant 0 : index
      %15 = vector.load %arg5[%c0_14, %c0_15] : memref<1x128xf32, #tpu.memory_space<vmem>>, vector<1x128xf32>
      %16 = vector.broadcast %15 : vector<1x128xf32> to vector<128x128xf32>
      %17 = arith.addf %14, %16 : vector<128x128xf32>
      %c0_16 = arith.constant 0 : index
      %c0_17 = arith.constant 0 : index
      %18 = vector.load %arg6[%c0_16, %c0_17] : memref<128x128xf32, #tpu.memory_space<vmem>>, vector<128x128xf32>
      tpu.vector_store %arg6[%c0_16, %c0_17], %17 {strides = array<i32>} : memref<128x128xf32, #tpu.memory_space<vmem>>, vector<128x128xf32>,
    } else {
    }
    return
  }
  func.func @transform_0(%arg0: i32, %arg1: i32) -> (i32, i32) {
    %c0_i32 = arith.constant 0 : i32
    return %arg0, %arg1 : i32, i32
  }
  func.func @transform_1(%arg0: i32, %arg1: i32) -> (i32, i32) {
    %c0_i32 = arith.constant 0 : i32
    %c0_i32_0 = arith.constant 0 : i32
    return %arg1, %c0_i32 : i32, i32
  }
  func.func @transform_2(%arg0: i32, %arg1: i32) -> (i32, i32) {
    %c0_i32 = arith.constant 0 : i32
    %c0_i32_0 = arith.constant 0 : i32
    %c0_i32_1 = arith.constant 0 : i32
    return %c0_i32, %c0_i32_0 : i32, i32
  }
  func.func @transform_3(%arg0: i32, %arg1: i32) -> (i32, i32) {
    %c0_i32 = arith.constant 0 : i32
    %c0_i32_0 = arith.constant 0 : i32
    %c0_i32_1 = arith.constant 0 : i32
    return %c0_i32, %c0_i32_0 : i32, i32
  }
  func.func @transform_4(%arg0: i32, %arg1: i32) -> (i32, i32) {
    %c0_i32 = arith.constant 0 : i32
    %c0_i32_0 = arith.constant 0 : i32
    return %arg0, %c0_i32 : i32, i32
  }
}

</mosaic_0001>

<bundles_post_ra>
// kernel: tpu_custom_call.1
= control target key start
LH: loop header
LB: loop body
LE: loop exit
PB: predicated region body
PF: predicated region fallthrough
CT: control target
= control target key end

     0   :  { %s1710_s0 = inlined_call_operand.hbm [shape: bf16[256,256], index: 0, kind: input, shape index: {}]   ;;  %s1711_s1 = inlined_call_operand.hbm [shape: bf16[256,128], index: 1, kind: input, shape index: {}]   ;;  %s1712_s2 = inlined_call_operand.hbm [shape: f32[128,128], index: 2, kind: input, shape index: {}]   ;;  %s1713_s3 = inlined_call_operand.vmem [shape: f32[1,128], index: 3, kind: input, shape index: {}]   ;;  %s1714_s4 = inlined_call_operand.hbm [shape: f32[256,128], index: 4, kind: output, shape index: {}]  }
   0x1   :  { %1726 = sst [smem:[#allocation25_spill]] %s1710_s0 }
   0x2   :  { %1727 = sst [smem:[#allocation26_spill]] %s1712_s2 }
   0x3   :  { %1728 = sst [smem:[#allocation27_spill]] %s1713_s3 }
   0x4   :  { %1729 = sst [smem:[#allocation28_spill]] %s1714_s4 }
   0x5   :  { %9 = vsyncpa [#allocation4], 0 }
   0x6   :  { %11 = vsyncpa [#allocation4 + $0x1], 0 }
   0x7   :  { %12 = vsyncpa [#allocation7], 0 }
   0x8   :  { %14 = vsyncpa [#allocation7 + $0x1], 0 }
   0x9   :  { %15 = vsyncpa [#allocation5], 0 }
   0xa   :  { %17 = vsyncpa [#allocation5 + $0x1], 0  ;;  %s1403_s15 = smov 0   ;;  %s1405_s16 = smov 0  }
   0xb   :  { %s1407_s17 = smov 0   ;;  %s1409_s18 = smov 0  }
   0xc   :  { %s1411_s19 = smov 0   ;;  %s1413_s20 = smov 0  }
   0xd   :  { %s1415_s21 = smov 0   ;;  %s1417_s22 = smov 0  }
   0xe   :  { %s1419_s23 = smov 0   ;;  %s1421_s24 = smov 0  }
   0xf   :  { %s1423_s25 = smov 0   ;;  %s1425_s26 = smov 0  }
  0x10   :  { %s1427_s27 = smov 0   ;;  %s1429_s28 = smov 0  }
  0x11 LB: > { %1730 = sst [smem:[#allocation14_spill]] %s1316_s15  ;;  %s1470_s29 = sadd.s32 4294967295, %s1368_s28   ;;  %s1368_s28 = sphi %s1429_s28, %s23_s28   ;;  %s1364_s27 = sphi %s1427_s27, %s1774_s27   ;;  %s1360_s26 = sphi %s1425_s26, %s1773_s26   ;;  %s1356_s25 = sphi %s1423_s25, %s1772_s25   ;;  %s1352_s24 = sphi %s1421_s24, %s1771_s24   ;;  %s1348_s23 = sphi %s1419_s23, %s1760_s23   ;;  %s1344_s22 = sphi %s1417_s22, %s1770_s22   ;;  %s1340_s21 = sphi %s1415_s21, %s1769_s21   ;;  %s1336_s20 = sphi %s1413_s20, %s1768_s20   ;;  %s1332_s19 = sphi %s1411_s19, %s1767_s19   ;;  %s1328_s18 = sphi %s1409_s18, %s1766_s18   ;;  %s1324_s17 = sphi %s1407_s17, %s1758_s17   ;;  %s1320_s16 = sphi %s1405_s16, %s1765_s16   ;;  %s1316_s15 = sphi %s1403_s15, %s1764_s15  }
  0x12   : > { %1731 = sst [smem:[#allocation15_spill]] %s1324_s17  ;;  %s796_s30 = sadd.s32 4294967294, %s1368_s28  }
  0x13   : > { %1732 = sst [smem:[#allocation16_spill]] %s1348_s23  ;;  %p57_p0 = scmp.ne.s32.totalorder %s1344_s22, %s1340_s21 }
  0x14   : > { %1733 = sst [smem:[#allocation17_spill]] %s1356_s25  ;;  %p58_p1 = scmp.eq.s32.totalorder %s1470_s29, 0 }
  0x15   : > { %1734 = sst [smem:[#allocation18_spill]] %s1364_s27  ;;  %p83_p2 = scmp.ne.s32.totalorder %s1332_s19, %s1328_s18 }
  0x16   : > { %p148_p3 = scmp.ne.s32.totalorder %s1324_s17, %s1320_s16  ;;  %p1480_p4 = por %p58_p1, %p57_p0 }
  0x17   : > { %p149_p5 = scmp.eq.s32.totalorder %s1470_s29, 3  ;;  %p1487_p6 = por %p83_p2, %p58_p1 }
  0x18   : > { %p154_p7 = scmp.ne.s32.totalorder %s1320_s16, %s1316_s15  ;;  %p155_p9 = scmp.eq.s32.totalorder %s796_s30, 3 }
  0x19   : > { %p1493_p8 = por %p149_p5, %p148_p3  ;;  %p797_p10 = scmp.ge.s32.totalorder %s1368_s28, 1 }
  0x1a   : > { %p162_p11 = scmp.lt.s32.totalorder %s1368_s28, 5  ;;  %p1499_p12 = por %p155_p9, %p154_p7 }
  0x1b   : > { %s1737_s7 = scalar_select %p1493_p8, 1, 0 }
  0x1c   : > { %s1739_s8 = scalar_select %p1499_p12, 1, 0 }
  0x1d   : > { %1738 = sst [smem:[#allocation19_spill]] %s1737_s7  ;;  %p1503_p13 = pnand %p797_p10, %p162_p11 }
  0x1e   : > { %1740 = sst [smem:[#allocation20_spill]] %s1739_s8  ;;  %s1370_s13 = smov [#allocation8]  }
  0x1f   : > { %s1742_s2 = sld [smem:[#allocation26_spill]]  ;;  %p984_p0 = pneg %p1503_p13 }
  0x20   : > { %s175_s14 = sshll.u32 %s1370_s13, 4  ;;  %s1715_s18 = smov 128   ;;  %s176_s14 = int_to_ptr.vmem [resolvable:$true] %s175_s14 }
  0x21   : > { %p985_p2 = pnand %p984_p0, %p58_p1  ;;  %s1372_s21 = smov 8  }
  0x22   : > { %s32_s30 = sadd.s32 1, %s1360_s26  ;;  %s35_s10 = sadd.s32 1, %s1364_s27 }
  0x23   : > { %p33_p3 = scmp.ge.s32.totalorder %s32_s30, 2  ;;  %s44_s11 = sadd.s32 1, %s1348_s23 }
  0x24   : > { %p51_p5 = scmp.ne.s32.totalorder %s1348_s23, %s1344_s22  ;;  %p52_p7 = scmp.eq.s32.totalorder %s1368_s28, 0 }
  0x25   : > { %s173_s12 = sshll.u32 %s1742_s2, 4  ;;  %s1776_s30 = smov (%p33_p3, %s32_s30), 0  ;;  %s174_s12 = int_to_ptr.hbm [resolvable:$true] %s173_s12 }
  0x26   : > { %987 = dma.hbm_to_vmem [thread:$0]  (!%p985_p2), %s174_s12, 2048, %s176_s14, [#allocation7], %s1715_s18, %s1715_s18, %s1372_s21  }
  0x27   : > { %1743 = sst [smem:[#allocation21_spill]] %s1776_s30  ;;  %s1778_s10 = smov (!%p33_p3, %s35_s10), %s1364_s27 }
  0x28   : > { %s1527_s13 = ssub.s32 %s1360_s26, %s1776_s30  ;;  %p1531_p9 = por %p52_p7, %p51_p5 }
  0x29   : > { %p37_p10 = scmp.ge.s32.totalorder %s1778_s10, 2  ;;  %p68_p11 = scmp.eq.s32.totalorder %s1527_s13, 0 }
  0x2a   : > { %s138_s14 = sadd.s32 1, %s1324_s17  ;;  %p1000_p0 = scmp.lt.s32.totalorder %s1368_s28, 4 }
  0x2b   : > { %s1780_s10 = smov (%p37_p10, %s1778_s10), 0  ;;  %s192_s21 = sand.u32 1, %s1348_s23  }
  0x2c   : > { %1745 = sst [smem:[#allocation22_spill]] %s1780_s10  ;;  %s883_s18 = sshll.u32 %s1364_s27, 5 }
  0x2d   : > { %s39_s2 = ssub.s32 %s1364_s27, %s1780_s10  ;;  %s800_s8 = sshll.u32 %s192_s21, 6 }
  0x2e   : > { %s41_s30 = sor.u32 %s1527_s13, %s39_s2  ;;  %p136_p2 = scmp.eq.s32.totalorder %s39_s2, 0 }
  0x2f   : > { %p42_p3 = scmp.eq.s32.totalorder %s41_s30, 0  ;;  %s201_s7 = sadd.s32 %s1360_s26, %s883_s18 }
  0x30   : > { %s1546_s15 = scalar_select %p136_p2, %s1324_s17, %s138_s14  }
  0x31   : > { %s1549_s4 = scalar_select %p42_p3, %s1348_s23, %s44_s11  }
  0x32   : > { %1746 = sst [smem:[#allocation23_spill]] %s1546_s15  ;;  %s803_s25 = sshll.u32 %s201_s7, 2 }
  0x33   : > { %1747 = sst [smem:[#allocation24_spill]] %s1549_s4  ;;  %s196_s3 = scalar_lea.vmem [#allocation3], %s800_s8 }
  0x34   : > { %s206_s10 = sshll.u32 %s196_s3, 4  ;;  %s1748_s0 = sld [smem:[#allocation25_spill]]  ;;  %s207_s10 = int_to_ptr.vmem [resolvable:$true] %s206_s10 }
  0x35   : > { %p989_p5 = pnand %p1000_p0, %p1531_p9  ;;  %s193_s11 = scalar_lea.sflag [#allocation4], %s192_s21 }
  0x36   : > { %s1373_s18 = smov 64   ;;  %s1374_s4 = smov 4  }
  0x37   : > { %s1749_s23 = smov 128   ;;  %s216_s7 = sand.u32 1, %s1368_s28  }
  0x38   : > { %s70_s8 = sadd.s32 1, %s1336_s20  ;;  %p77_p10 = scmp.ne.s32.totalorder %s1336_s20, %s1332_s19 }
  0x39   : > { %s1567_s3 = scalar_select %p68_p11, %s1336_s20, %s70_s8  }
  0x3a   : > { %s203_s30 = scalar_lea.hbm %s1748_s0, %s803_s25  ;;  %p79_p2 = por %p77_p10, %p52_p7 }
  0x3b   : > { %s204_s14 = sshll.u32 %s203_s30, 4  ;;  %s218_s25 = sand.u32 1, %s1336_s20   ;;  %s205_s14 = int_to_ptr.hbm [resolvable:$true] %s204_s14 }
  0x3c   : > { %991 = dma.hbm_to_vmem [thread:$0]  (!%p989_p5), %s205_s14, 1024, %s207_s10, %s193_s11, %s1749_s23, %s1373_s18, %s1374_s4  }
  0x3d   : > { %s804_s27 = sshll.u32 %s218_s25, 6  ;;  %s884_s12 = sshll.u32 %s1360_s26, 6 }
  0x3e   : > { %s225_s21 = scalar_lea.hbm %s1711_s1, %s884_s12  ;;  %s220_s15 = scalar_lea.vmem [#allocation6], %s804_s27 }
  0x3f   : > { %s226_s0 = sshll.u32 %s225_s21, 4  ;;  %s228_s17 = sshll.u32 %s220_s15, 4  ;;  %s227_s0 = int_to_ptr.hbm [resolvable:$true] %s226_s0  ;;  %s229_s17 = int_to_ptr.vmem [resolvable:$true] %s228_s17 }
  0x40   : > { %p992_p9 = pnand %p1000_p0, %p79_p2  ;;  %s217_s23 = scalar_lea.sflag [#allocation7], %s216_s7 }
  0x41   : > { %240 = sbr.rel (%p1503_p13) target bundleno = 508 (0x1fc), region = 36  ;;  %s242_s10 = sand.u32 (!%p1503_p13), 1, %s1344_s22  }
  0x42   : > { %994 = dma.hbm_to_vmem [thread:$0]  (!%p992_p9), %s227_s0, 1024, %s229_s17, %s217_s23, %s1373_s18, %s1373_s18, %s1374_s4  }
  0x43   : > { %s808_s13 = sshll.u32 (!%p1503_p13), %s242_s10, 6  ;;  %s243_s14 = scalar_lea.sflag (!%p1503_p13), [#allocation4], %s242_s10 }
  0x44   : > { %s1581_s11 = scalar_lea.vmem (!%p1503_p13), [#allocation3], %s808_s13 }
  0x46   : > { %1299 = dma.done.wait (%p1480_p4), %s243_s14, 1024  }
  0x47   : > { %1301 = vsyncadd (%p1480_p4), %s243_s14, 4294966272  ;;  %s252_s15 = sand.u32 1, %s1470_s29   ;;  %s254_s0 = sand.u32 1, %s1332_s19  }
  0x48   : > { %s809_s4 = sshll.u32 %s254_s0, 6  ;;  %s253_s17 = scalar_lea.sflag [#allocation7], %s252_s15 }
  0x49   : > { %s1589_s9 = scalar_lea.vmem [#allocation6], %s809_s4 }
  0x4a   : > { %1303 = dma.done.wait (%p1487_p6), %s253_s17, 1024  }
  0x4b   : > { %1305 = vsyncadd (%p1487_p6), %s253_s17, 4294966272 }
  0x4c   : > { %1307 = dma.done.wait (%p58_p1), [#allocation7], 2048  }
  0x4d   : > { %1309 = vsyncadd (%p58_p1), [#allocation7], 4294965248  ;;  %s289_s5 = sand.u32 1, %s1320_s16   ;;  %p812_p4 = scmp.ne.s32.totalorder %s1352_s24, 0 }
  0x4e   : > { %s811_s18 = sshll.u32 %s289_s5, 7 }
  0x4f   : > { %s1602_s7 = scalar_lea.vmem [#allocation9], %s811_s18  ;;  %298 = sbr.rel (%p812_p4) target bundleno = 101 (0x65), region = 52 }
  0x54   : > { %v1375_v0 = vmov 0.0  }
  0x55   : > { %299 = vst [vmem:[#allocation2 + $0x30] sm:$0xff] %v1375_v0 }
  0x56   : > { %300 = vst [vmem:[#allocation2] sm:$0xff] %v1375_v0 }
  0x57   : > { %301 = vst [vmem:[#allocation2 + $0x58] sm:$0xff] %v1375_v0 }
  0x58   : > { %302 = vst [vmem:[#allocation2 + $0x18] sm:$0xff] %v1375_v0 }
  0x59   : > { %303 = vst [vmem:[#allocation2 + $0x50] sm:$0xff] %v1375_v0 }
  0x5a   : > { %304 = vst [vmem:[#allocation2 + $0x68] sm:$0xff] %v1375_v0 }
  0x5b   : > { %305 = vst [vmem:[#allocation2 + $0x8] sm:$0xff] %v1375_v0 }
  0x5c   : > { %306 = vst [vmem:[#allocation2 + $0x48] sm:$0xff] %v1375_v0 }
  0x5d   : > { %307 = vst [vmem:[#allocation2 + $0x40] sm:$0xff] %v1375_v0 }
  0x5e   : > { %308 = vst [vmem:[#allocation2 + $0x20] sm:$0xff] %v1375_v0 }
  0x5f   : > { %309 = vst [vmem:[#allocation2 + $0x10] sm:$0xff] %v1375_v0 }
  0x60   : > { %310 = vst [vmem:[#allocation2 + $0x38] sm:$0xff] %v1375_v0 }
  0x61   : > { %311 = vst [vmem:[#allocation2 + $0x60] sm:$0xff] %v1375_v0 }
  0x62   : > { %312 = vst [vmem:[#allocation2 + $0x70] sm:$0xff] %v1375_v0 }
  0x63   : > { %313 = vst [vmem:[#allocation2 + $0x78] sm:$0xff] %v1375_v0 }
  0x64   : > { %314 = vst [vmem:[#allocation2 + $0x28] sm:$0xff] %v1375_v0 }
  0x65 PF: > { %v900_v1 = vld [vmem:[%s1589_s9 + $0x38] sm:$0xff]  ;;  %v899_v2 = vld [vmem:[%s1589_s9 + $0x30] sm:$0xff]  ;;  %v898_v3 = vld [vmem:[%s1589_s9 + $0x28] sm:$0xff]  ;;  %p877_p1 = scmp.ne.s32.totalorder %s1352_s24, 1 }
  0x66   : > { %459 = vmatpush.bf16.msra.mxu0 %v900_v1  ;;  %902 = vmatpush.bf16.msra.mxu1 %v900_v1  ;;  %v897_v4 = vld [vmem:[%s1589_s9 + $0x20] sm:$0xff]  ;;  %v896_v5 = vld [vmem:[%s1589_s9 + $0x18] sm:$0xff]  ;;  %v895_v6 = vld [vmem:[%s1589_s9 + $0x10] sm:$0xff]  ;;  %s1750_s6 = sld [smem:[#allocation27_spill]] (!%p877_p1) }
  0x67   : > { %903 = vmatpush.bf16.msra.mxu2 %v900_v1  ;;  %904 = vmatpush.bf16.msra.mxu3 %v900_v1  ;;  %v894_v7 = vld [vmem:[%s1589_s9 + $0x8] sm:$0xff]  ;;  %v893_v8 = vld [vmem:[%s1589_s9] sm:$0xff]  ;;  %v887_v10 = vld [vmem:[%s1581_s11 + $0x10] sm:$0xff] }
  0x68   : > { %v885_v9 = vld [vmem:[%s1581_s11] sm:$0xff]  ;;  %v891_v12 = vld [vmem:[%s1581_s11 + $0x30] sm:$0xff]  ;;  %v886_v13 = vld [vmem:[%s1581_s11 + $0x8] sm:$0xff] }
  0x69   : > { %v889_v11 = vld [vmem:[%s1581_s11 + $0x20] sm:$0xff]  ;;  %v888_v14 = vld [vmem:[%s1581_s11 + $0x18] sm:$0xff]  ;;  %v890_v15 = vld [vmem:[%s1581_s11 + $0x28] sm:$0xff] }
  0x6a   : > { %460 = vmatpush.bf16.msra.mxu0 %v899_v2  ;;  %905 = vmatpush.bf16.msra.mxu1 %v899_v2  ;;  %v892_v16 = vld [vmem:[%s1581_s11 + $0x38] sm:$0xff]  ;;  %v315_v17 = vld [vmem:[#allocation2 + $0x30] sm:$0xff]  ;;  %v323_v23 = vld [vmem:[#allocation2 + $0x40] sm:$0xff] }
  0x6b   : > { %906 = vmatpush.bf16.msra.mxu2 %v899_v2  ;;  %907 = vmatpush.bf16.msra.mxu3 %v899_v2  ;;  %v319_v18 = vld [vmem:[#allocation2 + $0x50] sm:$0xff]  ;;  %v327_v24 = vld [vmem:[#allocation2 + $0x60] sm:$0xff]  ;;  %v320_v26 = vld [vmem:[#allocation2 + $0x68] sm:$0xff] }
  0x6c   : > { %v316_v25 = vld [vmem:[#allocation2] sm:$0xff]  ;;  %v328_v36 = vld [vmem:[#allocation2 + $0x70] sm:$0xff]  ;;  %v317_v37 = vld [vmem:[#allocation2 + $0x58] sm:$0xff] }
  0x6d   : > { %v324_v35 = vld [vmem:[#allocation2 + $0x20] sm:$0xff]  ;;  %v321_v38 = vld [vmem:[#allocation2 + $0x8] sm:$0xff]  ;;  %v325_v47 = vld [vmem:[#allocation2 + $0x10] sm:$0xff] }
  0x6e   : > { %461 = vmatpush.bf16.msra.mxu0 %v898_v3  ;;  %908 = vmatpush.bf16.msra.mxu1 %v898_v3  ;;  %v329_v48 = vld [vmem:[#allocation2 + $0x78] sm:$0xff]  ;;  %v322_v50 = vld [vmem:[#allocation2 + $0x48] sm:$0xff] }
  0x6f   : > { %909 = vmatpush.bf16.msra.mxu2 %v898_v3  ;;  %910 = vmatpush.bf16.msra.mxu3 %v898_v3  ;;  %v318_v49 = vld [vmem:[#allocation2 + $0x18] sm:$0xff]  ;;  %v330_v60 = vld [vmem:[#allocation2 + $0x28] sm:$0xff] }
  0x70   : > { %v326_v59 = vld [vmem:[#allocation2 + $0x38] sm:$0xff] }
  0x72   : > { %462 = vmatpush.bf16.msra.mxu0 %v897_v4  ;;  %911 = vmatpush.bf16.msra.mxu1 %v897_v4 }
  0x73   : > { %912 = vmatpush.bf16.msra.mxu2 %v897_v4  ;;  %913 = vmatpush.bf16.msra.mxu3 %v897_v4 }
  0x76   : > { %463 = vmatpush.bf16.msra.mxu0 %v896_v5  ;;  %914 = vmatpush.bf16.msra.mxu1 %v896_v5 }
  0x77   : > { %915 = vmatpush.bf16.msra.mxu2 %v896_v5  ;;  %916 = vmatpush.bf16.msra.mxu3 %v896_v5 }
  0x7a   : > { %464 = vmatpush.bf16.msra.mxu0 %v895_v6  ;;  %917 = vmatpush.bf16.msra.mxu1 %v895_v6 }
  0x7b   : > { %918 = vmatpush.bf16.msra.mxu2 %v895_v6  ;;  %919 = vmatpush.bf16.msra.mxu3 %v895_v6 }
  0x7e   : > { %465 = vmatpush.bf16.msra.mxu0 %v894_v7  ;;  %920 = vmatpush.bf16.msra.mxu1 %v894_v7 }
  0x7f   : > { %921 = vmatpush.bf16.msra.mxu2 %v894_v7  ;;  %922 = vmatpush.bf16.msra.mxu3 %v894_v7 }
  0x82   : > { %466 = vmatpush.bf16.msra.mxu0 %v893_v8  ;;  %923 = vmatpush.bf16.msra.mxu1 %v893_v8 }
  0x83   : > { %924 = vmatpush.bf16.msra.mxu2 %v893_v8  ;;  %925 = vmatpush.bf16.msra.mxu3 %v893_v8 }
  0x85   : > { %467 = vmatmul.bf16.vlgmr.msra.gmra.mxu0 %v885_v9  ;;  %477 = vmatmul.bf16.vlgmr.msra.gmra.mxu1 %v887_v10 }
  0x86   : > { %487 = vmatmul.bf16.vlgmr.msra.gmra.mxu2 %v889_v11  ;;  %497 = vmatmul.bf16.vlgmr.msra.gmra.mxu3 %v891_v12 }
  0x95   : > { %472 = vmatmul.bf16.gmra.mxu0 %v886_v13  ;;  %482 = vmatmul.bf16.gmra.mxu1 %v888_v14 }
  0x96   : > { %492 = vmatmul.bf16.gmra.mxu2 %v890_v15  ;;  %502 = vmatmul.bf16.gmra.mxu3 %v892_v16 }
 0x102   : > { %v468_v19 = vpop.f32.mrf.mxu0  ;;  %v478_v20 = vpop.f32.mrf.mxu1 }
 0x103   : > { %v508_v21 = vadd.f32 %v468_v19, %v315_v17  ;;  %v512_v22 = vadd.f32 %v478_v20, %v319_v18 }
 0x105   : > { %524 = vst [vmem:[#allocation2 + $0x30] sm:$0xff] %v508_v21 }
 0x106   : > { %528 = vst [vmem:[#allocation2 + $0x50] sm:$0xff] %v512_v22 }
 0x109   : > { %v488_v27 = vpop.f32.mrf.mxu2  ;;  %v498_v28 = vpop.f32.mrf.mxu3 }
 0x10a   : > { %v516_v29 = vadd.f32 %v488_v27, %v323_v23  ;;  %v520_v30 = vadd.f32 %v498_v28, %v327_v24  ;;  %v470_v31 = vpop.f32.mrf.mxu0  ;;  %v480_v32 = vpop.f32.mrf.mxu1 }
 0x10b   : > { %v509_v33 = vadd.f32 %v470_v31, %v316_v25  ;;  %v513_v34 = vadd.f32 %v480_v32, %v320_v26 }
 0x10c   : > { %532 = vst [vmem:[#allocation2 + $0x40] sm:$0xff] %v516_v29 }
 0x10d   : > { %536 = vst [vmem:[#allocation2 + $0x60] sm:$0xff] %v520_v30 }
 0x10e   : > { %525 = vst [vmem:[#allocation2] sm:$0xff] %v509_v33 }
 0x10f   : > { %529 = vst [vmem:[#allocation2 + $0x68] sm:$0xff] %v513_v34 }
 0x111   : > { %v490_v39 = vpop.f32.mrf.mxu2  ;;  %v500_v40 = vpop.f32.mrf.mxu3 }
 0x112   : > { %v517_v41 = vadd.f32 %v490_v39, %v324_v35  ;;  %v521_v42 = vadd.f32 %v500_v40, %v328_v36  ;;  %v473_v43 = vpop.f32.mrf.mxu0  ;;  %v483_v44 = vpop.f32.mrf.mxu1 }
 0x113   : > { %v510_v45 = vadd.f32 %v473_v43, %v317_v37  ;;  %v514_v46 = vadd.f32 %v483_v44, %v321_v38 }
 0x114   : > { %533 = vst [vmem:[#allocation2 + $0x20] sm:$0xff] %v517_v41 }
 0x115   : > { %537 = vst [vmem:[#allocation2 + $0x70] sm:$0xff] %v521_v42 }
 0x116   : > { %526 = vst [vmem:[#allocation2 + $0x58] sm:$0xff] %v510_v45 }
 0x117   : > { %530 = vst [vmem:[#allocation2 + $0x8] sm:$0xff] %v514_v46 }
 0x119   : > { %v493_v51 = vpop.f32.mrf.mxu2  ;;  %v503_v52 = vpop.f32.mrf.mxu3 }
 0x11a   : > { %v518_v53 = vadd.f32 %v493_v51, %v325_v47  ;;  %v522_v54 = vadd.f32 %v503_v52, %v329_v48  ;;  %v475_v55 = vpop.f32.mrf.mxu0  ;;  %v485_v56 = vpop.f32.mrf.mxu1 }
 0x11b   : > { %v511_v57 = vadd.f32 %v475_v55, %v318_v49  ;;  %v515_v58 = vadd.f32 %v485_v56, %v322_v50 }
 0x11c   : > { %534 = vst [vmem:[#allocation2 + $0x10] sm:$0xff] %v518_v53 }
 0x11d   : > { %538 = vst [vmem:[#allocation2 + $0x78] sm:$0xff] %v522_v54 }
 0x11e   : > { %527 = vst [vmem:[#allocation2 + $0x18] sm:$0xff] %v511_v57 }
 0x11f   : > { %531 = vst [vmem:[#allocation2 + $0x48] sm:$0xff] %v515_v58 }
 0x121   : > { %v495_v61 = vpop.f32.mrf.mxu2  ;;  %v505_v62 = vpop.f32.mrf.mxu3  ;;  %543 = sbr.rel (%p877_p1) target bundleno = 486 (0x1e6), region = 56 }
 0x122   : > { %v519_v63 = vadd.f32 %v495_v61, %v326_v59  ;;  %v523_v0 = vadd.f32 %v505_v62, %v330_v60 }
 0x124   : > { %535 = vst [vmem:[#allocation2 + $0x38] sm:$0xff] %v519_v63 }
 0x125   : > { %539 = vst [vmem:[#allocation2 + $0x28] sm:$0xff] %v523_v0 }
 0x126   : > { %v575_v1 = vld [vmem:[#allocation8 + $0x78] sm:$0xff]  ;;  %v574_v2 = vld [vmem:[#allocation8 + $0x70] sm:$0xff]  ;;  %v573_v3 = vld [vmem:[#allocation8 + $0x68] sm:$0xff] }
 0x127   : > { %927 = vmatpush.msra.mxu2 %v575_v1  ;;  %928 = vmatpush.msra.mxu3 %v575_v1  ;;  %v572_v4 = vld [vmem:[#allocation8 + $0x60] sm:$0xff]  ;;  %v571_v5 = vld [vmem:[#allocation8 + $0x58] sm:$0xff]  ;;  %v570_v6 = vld [vmem:[#allocation8 + $0x50] sm:$0xff] }
 0x128   : > { %580 = vmatpush.msra.mxu0 %v575_v1  ;;  %926 = vmatpush.msra.mxu1 %v575_v1  ;;  %v569_v7 = vld [vmem:[#allocation8 + $0x48] sm:$0xff]  ;;  %v568_v8 = vld [vmem:[#allocation8 + $0x40] sm:$0xff]  ;;  %v567_v9 = vld [vmem:[#allocation8 + $0x38] sm:$0xff] }
 0x129   : > { %930 = vmatpush.msra.mxu2 %v574_v2  ;;  %931 = vmatpush.msra.mxu3 %v574_v2  ;;  %v566_v10 = vld [vmem:[#allocation8 + $0x30] sm:$0xff]  ;;  %v565_v11 = vld [vmem:[#allocation8 + $0x28] sm:$0xff]  ;;  %v564_v12 = vld [vmem:[#allocation8 + $0x20] sm:$0xff] }
 0x12a   : > { %581 = vmatpush.msra.mxu0 %v574_v2  ;;  %929 = vmatpush.msra.mxu1 %v574_v2  ;;  %v563_v13 = vld [vmem:[#allocation8 + $0x18] sm:$0xff]  ;;  %v562_v14 = vld [vmem:[#allocation8 + $0x10] sm:$0xff]  ;;  %v561_v15 = vld [vmem:[#allocation8 + $0x8] sm:$0xff] }
 0x12b   : > { %933 = vmatpush.msra.mxu2 %v573_v3  ;;  %934 = vmatpush.msra.mxu3 %v573_v3  ;;  %v560_v16 = vld [vmem:[#allocation8] sm:$0xff]  ;;  %v544_v19 = vld [vmem:[#allocation2 + $0x30] sm:$0xff]  ;;  %v549_v24 = vld [vmem:[#allocation2 + $0x68] sm:$0xff] }
 0x12c   : > { %582 = vmatpush.msra.mxu0 %v573_v3  ;;  %932 = vmatpush.msra.mxu1 %v573_v3  ;;  %v552_v17 = vld [vmem:[#allocation2 + $0x40] sm:$0xff]  ;;  %v548_v20 = vld [vmem:[#allocation2 + $0x50] sm:$0xff]  ;;  %v558_v26 = vld [vmem:[#allocation2 + $0x78] sm:$0xff] }
 0x12d   : > { %936 = vmatpush.msra.mxu2 %v572_v4  ;;  %937 = vmatpush.msra.mxu3 %v572_v4  ;;  %v556_v18 = vld [vmem:[#allocation2 + $0x60] sm:$0xff]  ;;  %v557_v22 = vld [vmem:[#allocation2 + $0x70] sm:$0xff]  ;;  %v546_v27 = vld [vmem:[#allocation2 + $0x58] sm:$0xff] }
 0x12e   : > { %583 = vmatpush.msra.mxu0 %v572_v4  ;;  %935 = vmatpush.msra.mxu1 %v572_v4  ;;  %v553_v21 = vld [vmem:[#allocation2 + $0x20] sm:$0xff]  ;;  %v554_v25 = vld [vmem:[#allocation2 + $0x10] sm:$0xff]  ;;  %v550_v28 = vld [vmem:[#allocation2 + $0x8] sm:$0xff] }
 0x12f   : > { %939 = vmatpush.msra.mxu2 %v571_v5  ;;  %940 = vmatpush.msra.mxu3 %v571_v5  ;;  %v545_v23 = vld [vmem:[#allocation2] sm:$0xff]  ;;  %v555_v29 = vld [vmem:[#allocation2 + $0x38] sm:$0xff]  ;;  %v559_v30 = vld [vmem:[#allocation2 + $0x28] sm:$0xff] }
 0x130   : > { %584 = vmatpush.msra.mxu0 %v571_v5  ;;  %938 = vmatpush.msra.mxu1 %v571_v5  ;;  %v547_v31 = vld [vmem:[#allocation2 + $0x18] sm:$0xff]  ;;  %v551_v32 = vld [vmem:[#allocation2 + $0x48] sm:$0xff]  ;;  %v1123_v33 = vld [vmem:[%s1750_s6] ss:$0 sm:$0xff] }
 0x131   : > { %942 = vmatpush.msra.mxu2 %v570_v6  ;;  %943 = vmatpush.msra.mxu3 %v570_v6 }
 0x132   : > { %585 = vmatpush.msra.mxu0 %v570_v6  ;;  %941 = vmatpush.msra.mxu1 %v570_v6 }
 0x133   : > { %945 = vmatpush.msra.mxu2 %v569_v7  ;;  %946 = vmatpush.msra.mxu3 %v569_v7 }
 0x134   : > { %586 = vmatpush.msra.mxu0 %v569_v7  ;;  %944 = vmatpush.msra.mxu1 %v569_v7 }
 0x135   : > { %948 = vmatpush.msra.mxu2 %v568_v8  ;;  %949 = vmatpush.msra.mxu3 %v568_v8 }
 0x136   : > { %587 = vmatpush.msra.mxu0 %v568_v8  ;;  %947 = vmatpush.msra.mxu1 %v568_v8 }
 0x137   : > { %951 = vmatpush.msra.mxu2 %v567_v9  ;;  %952 = vmatpush.msra.mxu3 %v567_v9 }
 0x138   : > { %588 = vmatpush.msra.mxu0 %v567_v9  ;;  %950 = vmatpush.msra.mxu1 %v567_v9 }
 0x139   : > { %954 = vmatpush.msra.mxu2 %v566_v10  ;;  %955 = vmatpush.msra.mxu3 %v566_v10 }
 0x13a   : > { %589 = vmatpush.msra.mxu0 %v566_v10  ;;  %953 = vmatpush.msra.mxu1 %v566_v10 }
 0x13b   : > { %957 = vmatpush.msra.mxu2 %v565_v11  ;;  %958 = vmatpush.msra.mxu3 %v565_v11 }
 0x13c   : > { %590 = vmatpush.msra.mxu0 %v565_v11  ;;  %956 = vmatpush.msra.mxu1 %v565_v11 }
 0x13d   : > { %960 = vmatpush.msra.mxu2 %v564_v12  ;;  %961 = vmatpush.msra.mxu3 %v564_v12 }
 0x13e   : > { %591 = vmatpush.msra.mxu0 %v564_v12  ;;  %959 = vmatpush.msra.mxu1 %v564_v12 }
 0x13f   : > { %963 = vmatpush.msra.mxu2 %v563_v13  ;;  %964 = vmatpush.msra.mxu3 %v563_v13 }
 0x140   : > { %592 = vmatpush.msra.mxu0 %v563_v13  ;;  %962 = vmatpush.msra.mxu1 %v563_v13 }
 0x141   : > { %966 = vmatpush.msra.mxu2 %v562_v14  ;;  %967 = vmatpush.msra.mxu3 %v562_v14 }
 0x142   : > { %593 = vmatpush.msra.mxu0 %v562_v14  ;;  %965 = vmatpush.msra.mxu1 %v562_v14 }
 0x143   : > { %969 = vmatpush.msra.mxu2 %v561_v15  ;;  %970 = vmatpush.msra.mxu3 %v561_v15 }
 0x144   : > { %594 = vmatpush.msra.mxu0 %v561_v15  ;;  %968 = vmatpush.msra.mxu1 %v561_v15 }
 0x145   : > { %972 = vmatpush.msra.mxu2 %v560_v16  ;;  %973 = vmatpush.msra.mxu3 %v560_v16 }
 0x146   : > { %620 = vmatmul.f32.vlgmr.msra.gmra.mxu2 %v552_v17  ;;  %632 = vmatmul.f32.vlgmr.msra.gmra.mxu3 %v556_v18 }
 0x147   : > { %595 = vmatpush.msra.mxu0 %v560_v16  ;;  %971 = vmatpush.msra.mxu1 %v560_v16 }
 0x148   : > { %596 = vmatmul.f32.vlgmr.msra.gmra.mxu0 %v544_v19  ;;  %608 = vmatmul.f32.vlgmr.msra.gmra.mxu1 %v548_v20 }
 0x14e   : > { %623 = vmatmul.f32.gmra.mxu2 %v553_v21  ;;  %635 = vmatmul.f32.gmra.mxu3 %v557_v22 }
 0x150   : > { %599 = vmatmul.f32.gmra.mxu0 %v545_v23  ;;  %611 = vmatmul.f32.gmra.mxu1 %v549_v24 }
 0x156   : > { %626 = vmatmul.f32.gmra.mxu2 %v554_v25  ;;  %638 = vmatmul.f32.gmra.mxu3 %v558_v26 }
 0x158   : > { %602 = vmatmul.f32.gmra.mxu0 %v546_v27  ;;  %614 = vmatmul.f32.gmra.mxu1 %v550_v28 }
 0x15e   : > { %629 = vmatmul.f32.gmra.mxu2 %v555_v29  ;;  %641 = vmatmul.f32.gmra.mxu3 %v559_v30 }
 0x160   : > { %605 = vmatmul.f32.gmra.mxu0 %v547_v31  ;;  %617 = vmatmul.f32.gmra.mxu1 %v551_v32 }
 0x1c5   : > { %v597_v34 = vpop.f32.mrf.mxu0  ;;  %v609_v35 = vpop.f32.mrf.mxu1 }
 0x1c6   : > { %v598_v36 = vadd.f32 %v1123_v33, %v597_v34  ;;  %v610_v37 = vadd.f32 %v1123_v33, %v609_v35 }
 0x1c8   : > { %645 = vst [vmem:[%s1602_s7] sm:$0xff] %v598_v36 }
 0x1c9   : > { %649 = vst [vmem:[%s1602_s7 + $0x20] sm:$0xff] %v610_v37  ;;  %v621_v38 = vpop.f32.mrf.mxu2  ;;  %v633_v39 = vpop.f32.mrf.mxu3 }
 0x1ca   : > { %v622_v40 = vadd.f32 %v1123_v33, %v621_v38  ;;  %v634_v41 = vadd.f32 %v1123_v33, %v633_v39 }
 0x1cc   : > { %653 = vst [vmem:[%s1602_s7 + $0x40] sm:$0xff] %v622_v40 }
 0x1cd   : > { %657 = vst [vmem:[%s1602_s7 + $0x60] sm:$0xff] %v634_v41  ;;  %v600_v42 = vpop.f32.mrf.mxu0  ;;  %v612_v43 = vpop.f32.mrf.mxu1 }
 0x1ce   : > { %v601_v44 = vadd.f32 %v1123_v33, %v600_v42  ;;  %v613_v45 = vadd.f32 %v1123_v33, %v612_v43 }
 0x1d0   : > { %646 = vst [vmem:[%s1602_s7 + $0x8] sm:$0xff] %v601_v44 }
 0x1d1   : > { %650 = vst [vmem:[%s1602_s7 + $0x28] sm:$0xff] %v613_v45  ;;  %v624_v46 = vpop.f32.mrf.mxu2  ;;  %v636_v47 = vpop.f32.mrf.mxu3 }
 0x1d2   : > { %v625_v48 = vadd.f32 %v1123_v33, %v624_v46  ;;  %v637_v49 = vadd.f32 %v1123_v33, %v636_v47 }
 0x1d4   : > { %654 = vst [vmem:[%s1602_s7 + $0x48] sm:$0xff] %v625_v48 }
 0x1d5   : > { %658 = vst [vmem:[%s1602_s7 + $0x68] sm:$0xff] %v637_v49  ;;  %v603_v50 = vpop.f32.mrf.mxu0  ;;  %v615_v51 = vpop.f32.mrf.mxu1 }
 0x1d6   : > { %v604_v52 = vadd.f32 %v1123_v33, %v603_v50  ;;  %v616_v53 = vadd.f32 %v1123_v33, %v615_v51 }
 0x1d8   : > { %647 = vst [vmem:[%s1602_s7 + $0x10] sm:$0xff] %v604_v52 }
 0x1d9   : > { %651 = vst [vmem:[%s1602_s7 + $0x30] sm:$0xff] %v616_v53  ;;  %v627_v54 = vpop.f32.mrf.mxu2  ;;  %v639_v55 = vpop.f32.mrf.mxu3 }
 0x1da   : > { %v628_v56 = vadd.f32 %v1123_v33, %v627_v54  ;;  %v640_v57 = vadd.f32 %v1123_v33, %v639_v55 }
 0x1dc   : > { %655 = vst [vmem:[%s1602_s7 + $0x50] sm:$0xff] %v628_v56 }
 0x1dd   : > { %659 = vst [vmem:[%s1602_s7 + $0x70] sm:$0xff] %v640_v57  ;;  %v606_v58 = vpop.f32.mrf.mxu0  ;;  %v618_v59 = vpop.f32.mrf.mxu1 }
 0x1de   : > { %v607_v60 = vadd.f32 %v1123_v33, %v606_v58  ;;  %v619_v61 = vadd.f32 %v1123_v33, %v618_v59 }
 0x1e0   : > { %648 = vst [vmem:[%s1602_s7 + $0x18] sm:$0xff] %v607_v60 }
 0x1e1   : > { %652 = vst [vmem:[%s1602_s7 + $0x38] sm:$0xff] %v619_v61  ;;  %v630_v62 = vpop.f32.mrf.mxu2  ;;  %v642_v63 = vpop.f32.mrf.mxu3 }
 0x1e2   : > { %v631_v0 = vadd.f32 %v1123_v33, %v630_v62  ;;  %v643_v1 = vadd.f32 %v1123_v33, %v642_v63 }
 0x1e4   : > { %656 = vst [vmem:[%s1602_s7 + $0x58] sm:$0xff] %v631_v0 }
 0x1e5   : > { %660 = vst [vmem:[%s1602_s7 + $0x78] sm:$0xff] %v643_v1 }
 0x1e6 PF: > { %s1751_s8 = sld [smem:[#allocation17_spill]]  ;;  %s674_s23 = sshll.u32 %s1602_s7, 4  ;;  %s675_s23 = int_to_ptr.vmem [resolvable:$true] %s674_s23 }
 0x1e7   : > { %s1753_s30 = sld [smem:[#allocation28_spill]]  ;;  %s662_s13 = scalar_lea.sflag [#allocation5], %s289_s5 }
 0x1ec   : > { %s901_s27 = sshll.u32 %s1751_s8, 7 }
 0x1ed   : > { %s673_s21 = scalar_lea.hbm %s1753_s30, %s901_s27  ;;  %s1234_s4 = scalar_lea.hbm %s1753_s30, 256 }
 0x1ee   : > { %s676_s10 = sshll.u32 %s673_s21, 4  ;;  %s677_s10 = int_to_ptr.hbm [resolvable:$true] %s676_s10 }
 0x1ef   : > { %s1228_s14 = sshra.s32 %s677_s10, 4  ;;  %s1229_s14 = int_to_ptr.hbm [resolvable:$true] %s1228_s14 }
 0x1f0   : > { %s1230_s11 = scalar_lea.hbm %s1229_s14, 128  ;;  %p1235_p11 = scmp.lt.s32.totalorder %s1229_s14, %s1753_s30 }
 0x1f1   : > { %p1231_p6 = scmp.ne.s32.totalorder %s1229_s14, %s1230_s11  ;;  %p1236_p0 = scmp.lt.s32.totalorder %s1234_s4, %s1230_s11 }
 0x1f3   : > { %p1232_p13 = pnand %p1231_p6, %p1493_p8  ;;  %p1237_p3 = por %p1236_p0, %p1235_p11 }
 0x1f5   : > { %p1233_p7 = pneg %p1232_p13 }
 0x1f7   : > { %p1238_p5 = pnand %p1237_p3, %p1233_p7 }
 0x1f9   : > { %1241 = shalt.err (!%p1238_p5)
}
 0x1fa   : > { %s1376_s5 = smov 128   ;;  %s1377_s18 = smov 8  }
 0x1fb   : > { %982 = dma.vmem_to_hbm [thread:$0]  (%p1493_p8), %s675_s23, 2048, %s677_s10, %s662_s13, %s1376_s5, %s1376_s5, %s1377_s18  }
 0x1fc PF: > { %s1754_s7 = sld [smem:[#allocation14_spill]]  ;;  %p1002_p10 = scmp.ge.s32.totalorder %s1368_s28, 2 }
 0x1fe   : > { %p996_p2 = pnand %p1002_p10, %p1499_p12 }
 0x200   : > { %p997_p9 = pneg %p996_p2 }
 0x202   : > { %s691_s29 = sand.u32 1, %s1754_s7  }
 0x203   : > { %s692_s6 = scalar_lea.sflag [#allocation5], %s691_s29 }
 0x204   : > { %1311 = dma.done.wait (%p997_p9), %s692_s6, 2048  }
 0x205   : > { %1313 = vsyncadd (%p997_p9), %s692_s6, 4294965248  ;;  %s23_s28 = sadd.s32 1, %s1368_s28   ;;  %s1757_s25 = sld [smem:[#allocation15_spill]] }
 0x206   : > { %p1663_p4 = scmp.ge.s32.totalorder %s23_s28, 6   ;;  %s1758_s17 = sld [smem:[#allocation23_spill]] }
 0x207   : > { %s1759_s27 = sld [smem:[#allocation16_spill]]  ;;  %s1764_s15 = smov %s1320_s16 }
 0x208   : > { %s1760_s23 = sld [smem:[#allocation24_spill]]  ;;  %s1766_s18 = smov %s1332_s19 }
 0x209   : > { %s1761_s12 = sld [smem:[#allocation18_spill]]  ;;  %s1767_s19 = smov %s1336_s20 }
 0x20a   : > { %s1762_s2 = sld [smem:[#allocation21_spill]]  ;;  %s1768_s20 = smov %s1567_s3 }
 0x20b   : > { %s1763_s10 = sld [smem:[#allocation22_spill]]  ;;  %s1765_s16 = smov %s1757_s25 }
 0x20c   : > { %s1769_s21 = smov %s1344_s22  ;;  %s1771_s24 = smov %s1360_s26 }
 0x20d   : > { %s1770_s22 = smov %s1759_s27  ;;  %22 = sbr.rel (!%p1663_p4) target bundleno = 17 (0x11), region = 106 }
 0x20f   : > { %s1772_s25 = smov %s1761_s12 }
 0x210   : > { %s1773_s26 = smov %s1762_s2 }
 0x211   : > { %s1774_s27 = smov %s1763_s10 }
 0x212   :  { %698 = vsyncpa [#allocation4], 1 }
 0x213   :  { %700 = vsyncpa [#allocation4 + $0x1], 1 }
 0x214   :  { %701 = vsyncpa [#allocation7], 1 }
 0x215   :  { %703 = vsyncpa [#allocation7 + $0x1], 1 }
 0x216   :  { %704 = vsyncpa [#allocation5], 1 }
 0x217   :  { %706 = vsyncpa [#allocation5 + $0x1], 1 }

</bundles_post_ra>
